<compile_context>
chip_gen: v7x
topology: tpu7x:2x2x1
jax: 0.10.0
libtpu: 0.0.40
codegen_flags: <defaults>
</compile_context>

<pallas_src>
import math

import jax
import jax.numpy as jnp
from jax.experimental import pallas as pl
from jax.experimental.pallas import tpu as pltpu

_LANES = 128                         # lane-dense last dim of the flattened slab
_SUBLANE = 8                         # f32 sublane rows per vreg
_TARGET_TILE_BYTES = 4 * 1024 * 1024 # ~4 MiB per DMA; no VMEM is used, so safe on all gens


def _make_dma_copy_kernel(tile_rows: int, num_full: int, rem_rows: int):
    """Kernel: one contiguous HBM->HBM DMA of `tile_rows` rows per grid step."""

    def kernel(x_hbm, o_hbm, sem):
        i = pl.program_id(0)

        def copy_rows(start, nrows):
            cp = pltpu.make_async_copy(
                x_hbm.at[pl.ds(start, nrows)],
                o_hbm.at[pl.ds(start, nrows)],
                sem,
            )
            cp.start()
            cp.wait()

        if rem_rows == 0:
            # All tiles are full-size.
            start = pl.multiple_of(i * tile_rows, tile_rows)
            copy_rows(start, tile_rows)
        else:
            # Full tiles, then one statically-sized remainder tile.
            @pl.when(i < num_full)
            def _():
                start = pl.multiple_of(i * tile_rows, tile_rows)
                copy_rows(start, tile_rows)

            @pl.when(i == num_full)
            def _():
                copy_rows(num_full * tile_rows, rem_rows)

    return kernel


def _identity_copy(x):
    """Identity pass-through as a tiled HBM->HBM DMA copy."""
    shape, dtype = x.shape, x.dtype
    total = math.prod(shape)
    itemsize = jnp.dtype(dtype).itemsize

    # Degenerate sizes: true zero-byte pass-through (no kernel, no HBM traffic).
    if total == 0 or total % _LANES != 0:
        return x

    rows = total // _LANES
    # Sublane pack per dtype: 8 (f32), 16 (bf16), 32 (int8/fp8).
    pack = max(_SUBLANE, (_SUBLANE * 4) // itemsize)
    row_bytes = _LANES * itemsize

    # ~4 MiB tiles, rounded to the dtype sublane pack.
    tile_rows = max(pack, (_TARGET_TILE_BYTES // row_bytes) // pack * pack)
    # Force >= 2 grid steps when possible so the "parallel" axis can shard the
    # copy across both TensorCores on v7x.
    if rows >= 2 * pack:
        tile_rows = min(tile_rows, max(pack, (rows // 2) // pack * pack))
    tile_rows = min(tile_rows, rows)

    num_full = rows // tile_rows
    rem_rows = rows - num_full * tile_rows
    num_tiles = num_full + (1 if rem_rows else 0)

    flat = x.reshape(rows, _LANES)
    out_flat = pl.pallas_call(
        _make_dma_copy_kernel(tile_rows, num_full, rem_rows),
        out_shape=jax.ShapeDtypeStruct((rows, _LANES), dtype),
        grid=(num_tiles,),
        in_specs=[pl.BlockSpec(memory_space=pl.ANY)],
        out_specs=pl.BlockSpec(memory_space=pl.ANY),
        scratch_shapes=[pltpu.SemaphoreType.DMA],
        compiler_params=pltpu.CompilerParams(
            dimension_semantics=("parallel",),
        ),
    )(flat)
    return out_flat.reshape(shape)


class BaseDecoderPallas:
    """JAX/Pallas counterpart of trainer.models.decoder.base.BaseDecoder."""

    def __init__(self, in_channels, in_strides):
        self.in_channels = in_channels
        self.in_strides = in_strides
        # Base class leaves these undefined (-1), mirroring the PyTorch code.
        self.out_channels = -1
        self.out_strides = -1

    def forward(self, x):
        # Abstract forward: faithful base-class behavior is identity
        # pass-through; supports a single tensor or a list of tensors.
        if isinstance(x, (list, tuple)):
            return type(x)(_identity_copy(xi) for xi in x)
        return _identity_copy(x)

    def __call__(self, x):
        return self.forward(x)


if __name__ == "__main__":
    key = jax.random.PRNGKey(0)
    # Small shapes consistent with a decoder input feature map (NCHW).
    N, C, H, W = 2, 4, 16, 16
    x = jax.random.normal(key, (N, C, H, W), dtype=jnp.float32)

    decoder = BaseDecoderPallas(in_channels=C, in_strides=4)

    # Single-tensor path.
    y = decoder(x)
    y = jax.block_until_ready(y)
    assert y.shape == x.shape and y.dtype == x.dtype
    assert bool(jnp.all(y == x))

    # Multi-scale (list) path, as decoders typically receive FPN-style inputs.
    k1, k2 = jax.random.split(key)
    xs = [x, jax.random.normal(k2, (N, C, H // 2, W // 2), dtype=jnp.float32)]
    ys = decoder(xs)
    ys = jax.block_until_ready(ys)
    for xi, yi in zip(xs, ys):
        assert yi.shape == xi.shape and yi.dtype == xi.dtype
        assert bool(jnp.all(yi == xi))

    print("KERNEL_OK")
</pallas_src>

<mosaic_0001>
module attributes {stable_mosaic.version = 11 : i64} {
  func.func @kernel(%arg0: i32, %arg1: memref<16x128xf32, #tpu.memory_space<any>>, %arg2: memref<16x128xf32, #tpu.memory_space<any>>, %arg3: memref<!tpu.dma_semaphore, #tpu.memory_space<semaphore_mem>>) attributes {dimension_semantics = [#tpu.dimension_semantics<parallel>], iteration_bounds = array<i64: 2>, scalar_prefetch = 0 : i64, scratch_operands = 1 : i64, tpu.core_type = #tpu.core_type<tc>, window_params = [{}, {}]} {
    %c8_i32 = arith.constant 8 : i32
    %0 = arith.muli %arg0, %c8_i32 : i32
    %1 = tpu.assume_multiple %0, 8 : i32
    %c0_i32 = arith.constant 0 : i32
    %2 = tpu.memref_slice %arg1[%1, %c0_i32] : memref<16x128xf32, #tpu.memory_space<any>> -> memref<8x128xf32, #tpu.memory_space<any>>
    %c0_i32_0 = arith.constant 0 : i32
    %3 = tpu.memref_slice %arg2[%1, %c0_i32_0] : memref<16x128xf32, #tpu.memory_space<any>> -> memref<8x128xf32, #tpu.memory_space<any>>
    tpu.enqueue_dma source(%2 : memref<8x128xf32, #tpu.memory_space<any>>) target(%3 : memref<8x128xf32, #tpu.memory_space<any>>) target_semaphore(%arg3 : memref<!tpu.dma_semaphore, #tpu.memory_space<semaphore_mem>>)
    %c0_i32_1 = arith.constant 0 : i32
    %4 = tpu.memref_slice %arg1[%1, %c0_i32_1] : memref<16x128xf32, #tpu.memory_space<any>> -> memref<8x128xf32, #tpu.memory_space<any>>
    %c0_i32_2 = arith.constant 0 : i32
    %5 = tpu.memref_slice %arg2[%1, %c0_i32_2] : memref<16x128xf32, #tpu.memory_space<any>> -> memref<8x128xf32, #tpu.memory_space<any>>
    tpu.wait_dma2 semaphore(%arg3 : memref<!tpu.dma_semaphore, #tpu.memory_space<semaphore_mem>>) src(%4 : memref<8x128xf32, #tpu.memory_space<any>>) dst(%5 : memref<8x128xf32, #tpu.memory_space<any>>)
    return
  }
}

</mosaic_0001>

<bundles_post_ra>
// kernel: tpu_custom_call.1
= control target key start
LH: loop header
LB: loop body
LE: loop exit
PB: predicated region body
PF: predicated region fallthrough
CT: control target
= control target key end

     0   :  { %s72_s6 = smov 0   ;;  %s95_s0 = inlined_call_operand.hbm [shape: f32[16,128], index: 0, kind: input, shape index: {}]   ;;  %s96_s1 = inlined_call_operand.hbm [shape: f32[16,128], index: 1, kind: output, shape index: {}]  }
   0x1 LB: > { %s53_s7 = sshll.u32 %s74_s6, 7  ;;  %s76_s14 = smov [#allocation2]   ;;  %s74_s6 = sphi %s72_s6, %s11_s6  }
   0x2   : > { %s15_s10 = scalar_lea.hbm %s95_s0, %s53_s7  ;;  %s17_s13 = scalar_lea.hbm %s96_s1, %s53_s7 }
   0x3   : > { %s77_s15 = smov [#allocation3]   ;;  %s78_s16 = smov 0  }
   0x4   : > { %30 = dma.general %s15_s10, 128, %s17_s13, %s76_s14, %s77_s15, [#allocation4], %s78_s16, 0  }
   0x5   : > { %70 = dma.done.wait [#allocation2], 128 }
   0x6   : > { %71 = vsyncadd [#allocation2], 4294967168  ;;  %s11_s6 = sadd.s32 1, %s74_s6  }
   0x7   : > { %p8_p0 = scmp.ge.s32.totalorder %s11_s6, 2  }
   0x9   :  { %10 = sbr.rel (!%p8_p0) target bundleno = 1 (0x1), region = 21 }
  0x10   :  { %34 = vsyncmov [#allocation2] }
  0x13   :  { %s35_s17 = vpop.sfrf %34 }
  0x14   :  { %p52_p1 = scmp.ne.s32.totalorder %s35_s17, 0 }
  0x16   :  { %39 = shalt.err (%p52_p1)  }

</bundles_post_ra>
